<compile_context>
chip_gen: v5e
topology: v5e:2x2
jax: 0.10.0
libtpu: 0.0.40
codegen_flags: <defaults>
</compile_context>

<pallas_src>
import jax
import jax.numpy as jnp
from jax.experimental import pallas as pl
from jax.experimental.pallas import tpu as pltpu


def _mlp_kernel(x_ref, w1t_ref, b1_ref, w2t_ref, b2_ref, out_ref):
    # x:    (TB, D_in)
    # w1t:  (D_in, H)   b1: (1, H)
    # w2t:  (H, C_pad)  b2: (1, C_pad)    (padded columns are all-zero)
    x = x_ref[...]

    # fc1: x @ w1t + b1 -> (TB, H), then ReLU.
    h = jnp.dot(x, w1t_ref[...], preferred_element_type=jnp.float32)
    h = jnp.maximum(h + b1_ref[...], 0.0)

    # fc2: h @ w2t + b2 -> (TB, C_pad)  (lane-dense output slab).
    y = jnp.dot(h, w2t_ref[...], preferred_element_type=jnp.float32)
    out_ref[...] = (y + b2_ref[...]).astype(out_ref.dtype)


def classification_net_forward(x, w1, b1, w2, b2, *, block_b=512):
    """Pallas forward pass equivalent to ClassificationNet.forward.

    x:  (B, input_units) float32
    w1: (hidden_units, input_units), b1: (hidden_units,)
    w2: (output_units, hidden_units), b2: (output_units,)
    returns (B, output_units) float32
    """
    B, d_in = x.shape
    h_units = w1.shape[0]
    c = w2.shape[0]

    LANE = 128
    c_pad = ((c + LANE - 1) // LANE) * LANE  # lane-dense output width

    # One-time wrapper-side prep: transpose weights to MXU-natural layout and
    # zero-pad the class dimension (zero weight columns -> identical math).
    w1t = w1.T                                                     # (D_in, H)
    w2t = jnp.zeros((h_units, c_pad), jnp.float32).at[:, :c].set(w2.T)
    b1_2d = b1.reshape(1, h_units)
    b2_2d = jnp.zeros((1, c_pad), jnp.float32).at[:, :c].set(b2.reshape(1, c))

    # Batch tile: multiple of 8 sublanes; pad B up to a whole number of tiles.
    tb = min(block_b, max(8, ((B + 7) // 8) * 8))
    tb = ((tb + 7) // 8) * 8
    b_pad = ((B + tb - 1) // tb) * tb
    if b_pad != B:
        x = jnp.zeros((b_pad, d_in), x.dtype).at[:B].set(x)

    out_padded = pl.pallas_call(
        _mlp_kernel,
        out_shape=jax.ShapeDtypeStruct((b_pad, c_pad), jnp.float32),
        grid_spec=pltpu.PrefetchScalarGridSpec(
            num_scalar_prefetch=0,
            grid=(b_pad // tb,),
            in_specs=[
                pl.BlockSpec((tb, d_in), lambda i: (i, 0)),      # x tile
                pl.BlockSpec((d_in, h_units), lambda i: (0, 0)),  # w1t resident
                pl.BlockSpec((1, h_units), lambda i: (0, 0)),     # b1 resident
                pl.BlockSpec((h_units, c_pad), lambda i: (0, 0)),  # w2t resident
                pl.BlockSpec((1, c_pad), lambda i: (0, 0)),       # b2 resident
            ],
            out_specs=pl.BlockSpec((tb, c_pad), lambda i: (i, 0)),
        ),
        compiler_params=pltpu.CompilerParams(
            dimension_semantics=("parallel",)),
    )(x, w1t, b1_2d, w2t, b2_2d)

    # Strip batch padding and the lane padding on the class dimension.
    return out_padded[:B, :c]


def init_params(key, input_units=30, hidden_units=64, output_units=2):
    """Deterministic PyTorch-Linear-style init (uniform in +-1/sqrt(fan_in))."""
    k1, k2, k3, k4 = jax.random.split(key, 4)
    bound1 = 1.0 / jnp.sqrt(jnp.float32(input_units))
    bound2 = 1.0 / jnp.sqrt(jnp.float32(hidden_units))
    w1 = jax.random.uniform(k1, (hidden_units, input_units), jnp.float32,
                            -bound1, bound1)
    b1 = jax.random.uniform(k2, (hidden_units,), jnp.float32, -bound1, bound1)
    w2 = jax.random.uniform(k3, (output_units, hidden_units), jnp.float32,
                            -bound2, bound2)
    b2 = jax.random.uniform(k4, (output_units,), jnp.float32, -bound2, bound2)
    return w1, b1, w2, b2


def _reference(x, w1, b1, w2, b2):
    return jnp.maximum(x @ w1.T + b1, 0.0) @ w2.T + b2


if __name__ == "__main__":
    key = jax.random.PRNGKey(0)
    kx, kp, kx2 = jax.random.split(key, 3)

    input_units, hidden_units, output_units = 30, 64, 2
    w1, b1, w2, b2 = init_params(kp, input_units, hidden_units, output_units)

    # Case 1: the module's nominal tiny-batch config (single grid step).
    batch = 8
    x = jax.random.normal(kx, (batch, input_units), jnp.float32)
    out = jax.block_until_ready(classification_net_forward(x, w1, b1, w2, b2))
    ref = _reference(x, w1, b1, w2, b2)
    assert out.shape == (batch, output_units)
    assert jnp.allclose(out, ref, atol=1e-5, rtol=1e-5)

    # Case 2: non-multiple batch with a small tile to exercise the batch grid
    # (grid > 1) and the batch-padding path.
    batch2 = 20
    x2 = jax.random.normal(kx2, (batch2, input_units), jnp.float32)
    out2 = jax.block_until_ready(
        classification_net_forward(x2, w1, b1, w2, b2, block_b=8))
    ref2 = _reference(x2, w1, b1, w2, b2)
    assert out2.shape == (batch2, output_units)
    assert jnp.allclose(out2, ref2, atol=1e-5, rtol=1e-5)

    print("KERNEL_OK")
</pallas_src>

<mosaic_0001>
module attributes {stable_mosaic.version = 11 : i64} {
  func.func @_mlp_kernel(%arg0: i32, %arg1: memref<8x30xf32, #tpu.memory_space<vmem>>, %arg2: memref<30x64xf32, #tpu.memory_space<vmem>>, %arg3: memref<1x64xf32, #tpu.memory_space<vmem>>, %arg4: memref<64x128xf32, #tpu.memory_space<vmem>>, %arg5: memref<1x128xf32, #tpu.memory_space<vmem>>, %arg6: memref<8x128xf32, #tpu.memory_space<vmem>>) attributes {dimension_semantics = [#tpu.dimension_semantics<parallel>], iteration_bounds = array<i64: 1>, scalar_prefetch = 0 : i64, scratch_operands = 0 : i64, tpu.core_type = #tpu.core_type<tc>, window_params = [{transform_indices = @transform_0, window_bounds = array<i64: 8, 30>}, {pipeline_mode = #tpu.pipeline_mode<synchronous>, transform_indices = @transform_1, window_bounds = array<i64: 30, 64>}, {pipeline_mode = #tpu.pipeline_mode<synchronous>, transform_indices = @transform_2, window_bounds = array<i64: 1, 64>}, {pipeline_mode = #tpu.pipeline_mode<synchronous>, transform_indices = @transform_3, window_bounds = array<i64: 64, 128>}, {pipeline_mode = #tpu.pipeline_mode<synchronous>, transform_indices = @transform_4, window_bounds = array<i64: 1, 128>}, {transform_indices = @transform_5, window_bounds = array<i64: 8, 128>}]} {
    %c0 = arith.constant 0 : index
    %c0_0 = arith.constant 0 : index
    %0 = vector.load %arg1[%c0, %c0_0] : memref<8x30xf32, #tpu.memory_space<vmem>>, vector<8x30xf32>
    %c0_1 = arith.constant 0 : index
    %c0_2 = arith.constant 0 : index
    %1 = vector.load %arg2[%c0_1, %c0_2] : memref<30x64xf32, #tpu.memory_space<vmem>>, vector<30x64xf32>
    %cst = arith.constant dense<0.000000e+00> : vector<8x64xf32>
    %2 = tpu.matmul %0, %1, %cst {dimension_numbers = #tpu.dot_dimension_numbers<[1], [0], [0], [1], [0, 0, 1, 1], [], []>} : vector<8x30xf32>, vector<30x64xf32>, vector<8x64xf32> -> vector<8x64xf32>
    %c0_3 = arith.constant 0 : index
    %c0_4 = arith.constant 0 : index
    %3 = vector.load %arg3[%c0_3, %c0_4] : memref<1x64xf32, #tpu.memory_space<vmem>>, vector<1x64xf32>
    %4 = vector.broadcast %3 : vector<1x64xf32> to vector<8x64xf32>
    %5 = arith.addf %2, %4 : vector<8x64xf32>
    %cst_5 = arith.constant 0.000000e+00 : f32
    %6 = vector.broadcast %cst_5 : f32 to vector<8x64xf32>
    %7 = arith.maximumf %5, %6 : vector<8x64xf32>
    %c0_6 = arith.constant 0 : index
    %c0_7 = arith.constant 0 : index
    %8 = vector.load %arg4[%c0_6, %c0_7] : memref<64x128xf32, #tpu.memory_space<vmem>>, vector<64x128xf32>
    %cst_8 = arith.constant dense<0.000000e+00> : vector<8x128xf32>
    %9 = tpu.matmul %7, %8, %cst_8 {dimension_numbers = #tpu.dot_dimension_numbers<[1], [0], [0], [1], [0, 0, 1, 1], [], []>} : vector<8x64xf32>, vector<64x128xf32>, vector<8x128xf32> -> vector<8x128xf32>
    %c0_9 = arith.constant 0 : index
    %c0_10 = arith.constant 0 : index
    %10 = vector.load %arg5[%c0_9, %c0_10] : memref<1x128xf32, #tpu.memory_space<vmem>>, vector<1x128xf32>
    %11 = vector.broadcast %10 : vector<1x128xf32> to vector<8x128xf32>
    %12 = arith.addf %9, %11 : vector<8x128xf32>
    %c0_11 = arith.constant 0 : index
    %c0_12 = arith.constant 0 : index
    %13 = vector.load %arg6[%c0_11, %c0_12] : memref<8x128xf32, #tpu.memory_space<vmem>>, vector<8x128xf32>
    tpu.vector_store %arg6[%c0_11, %c0_12], %12 {strides = array<i32>} : memref<8x128xf32, #tpu.memory_space<vmem>>, vector<8x128xf32>,
    return
  }
  func.func @transform_0(%arg0: i32) -> (i32, i32) {
    %c0_i32 = arith.constant 0 : i32
    %c0_i32_0 = arith.constant 0 : i32
    return %arg0, %c0_i32 : i32, i32
  }
  func.func @transform_1(%arg0: i32) -> (i32, i32) {
    %c0_i32 = arith.constant 0 : i32
    %c0_i32_0 = arith.constant 0 : i32
    %c0_i32_1 = arith.constant 0 : i32
    return %c0_i32, %c0_i32_0 : i32, i32
  }
  func.func @transform_2(%arg0: i32) -> (i32, i32) {
    %c0_i32 = arith.constant 0 : i32
    %c0_i32_0 = arith.constant 0 : i32
    %c0_i32_1 = arith.constant 0 : i32
    return %c0_i32, %c0_i32_0 : i32, i32
  }
  func.func @transform_3(%arg0: i32) -> (i32, i32) {
    %c0_i32 = arith.constant 0 : i32
    %c0_i32_0 = arith.constant 0 : i32
    %c0_i32_1 = arith.constant 0 : i32
    return %c0_i32, %c0_i32_0 : i32, i32
  }
  func.func @transform_4(%arg0: i32) -> (i32, i32) {
    %c0_i32 = arith.constant 0 : i32
    %c0_i32_0 = arith.constant 0 : i32
    %c0_i32_1 = arith.constant 0 : i32
    return %c0_i32, %c0_i32_0 : i32, i32
  }
  func.func @transform_5(%arg0: i32) -> (i32, i32) {
    %c0_i32 = arith.constant 0 : i32
    %c0_i32_0 = arith.constant 0 : i32
    return %arg0, %c0_i32 : i32, i32
  }
}

</mosaic_0001>

<bundles_post_ra>
// kernel: tpu_custom_call.1
= control target key start
LH: loop header
LB: loop body
LE: loop exit
PB: predicated region body
PF: predicated region fallthrough
CT: control target
= control target key end

     0   :  { %10 = vsyncpa [#allocation3], 0  ;;  %s326_s0 = inlined_call_operand.hbm [shape: f32[8,30], index: 0, kind: input, shape index: {}]   ;;  %s327_s1 = inlined_call_operand.hbm [shape: f32[30,64], index: 1, kind: input, shape index: {}]   ;;  %s328_s2 = inlined_call_operand.vmem [shape: f32[1,64], index: 2, kind: input, shape index: {}]   ;;  %s329_s3 = inlined_call_operand.hbm [shape: f32[64,128], index: 3, kind: input, shape index: {}]   ;;  %s330_s4 = inlined_call_operand.vmem [shape: f32[1,128], index: 4, kind: input, shape index: {}]   ;;  %s331_s5 = inlined_call_operand.hbm [shape: f32[8,128], index: 5, kind: output, shape index: {}]  }
   0x1   :  { %11 = vsyncpa [#allocation6], 0  ;;  %s28_s20 = sshll.u32 %s327_s1, 4  ;;  %s29_s20 = int_to_ptr.hbm [resolvable:$true] %s28_s20 }
   0x2   :  { %12 = vsyncpa [#allocation4], 0  ;;  %s272_s21 = smov [#allocation5]   ;;  %s18_s25 = sshll.u32 %s326_s0, 4  ;;  %s19_s25 = int_to_ptr.hbm [resolvable:$true] %s18_s25 }
   0x3   :  { %s30_s22 = sshll.u32 %s272_s21, 4  ;;  %s273_s26 = smov 128   ;;  %s31_s22 = int_to_ptr.vmem [resolvable:$true] %s30_s22 }
   0x4   :  { %s274_s27 = smov 8   ;;  %s275_s28 = smov [#allocation2]  }
   0x5   :  { %36 = dma.hbm_to_vmem [thread:$0]  %s29_s20, 512, %s31_s22, [#allocation6], %s273_s26, %s273_s26, %s274_s27  }
   0x6   :  { %s20_s29 = sshll.u32 %s275_s28, 4  ;;  %s43_s7 = sshll.u32 %s329_s3, 4  ;;  %s21_s29 = int_to_ptr.vmem [resolvable:$true] %s20_s29  ;;  %s44_s7 = int_to_ptr.hbm [resolvable:$true] %s43_s7 }
   0x7   :  { %23 = dma.hbm_to_vmem [thread:$0]  %s19_s25, 128, %s21_s29, [#allocation3]  }
   0x8   :  { %s276_s1 = smov [#allocation7]  }
   0x9   :  { %s45_s8 = sshll.u32 %s276_s1, 4  ;;  %s46_s8 = int_to_ptr.vmem [resolvable:$true] %s45_s8 }
   0xa   :  { %51 = dma.hbm_to_vmem [thread:$0]  %s44_s7, 1024, %s46_s8, [#allocation6], %s273_s26, %s273_s26, %s274_s27  }
   0xb   :  { %266 = dma.done.wait [#allocation3], 128  }
   0xc   :  { %267 = vsyncadd [#allocation3], 4294967168 }
   0xd   :  { %268 = dma.done.wait [#allocation6], 1536  }
   0xe   :  { %269 = vsyncadd [#allocation6], 4294965760  ;;  %vm79_vm0 = vcmask 1045504   ;;  %v70_v0 = vld [vmem:[#allocation5 + $0x18] sm:$0x3f]  ;;  %v69_v1 = vld [vmem:[#allocation5 + $0x10] sm:$0xff] }
   0xf   :  { %159 = vmatpush.msk.msra.mxu0 %vm79_vm0, %v70_v0  ;;  %v111_v2 = vld [vmem:[#allocation7 + $0x38] sm:$0xff]  ;;  %v68_v3 = vld [vmem:[#allocation5 + $0x8] sm:$0xff]  ;;  %v110_v4 = vld [vmem:[#allocation7 + $0x30] sm:$0xff]  ;;  %vm75_vm1 = vcmask 244736   ;;  %vm116_vm2 = vcmask 523264   ;;  %s277_s11 = smov [#allocation8]  }
  0x10   :  { %128 = vmatpush.msra.mxu1 %v111_v2  ;;  %v109_v5 = vld [vmem:[#allocation7 + $0x28] sm:$0xff]  ;;  %v67_v6 = vld [vmem:[#allocation5] sm:$0xff]  ;;  %v66_v7 = vld [vmem:[#allocation2] sm:$0xff]  ;;  %s146_s12 = sshll.u32 %s277_s11, 4  ;;  %s148_s15 = sshll.u32 %s331_s5, 4  ;;  %s147_s12 = int_to_ptr.vmem [resolvable:$true] %s146_s12  ;;  %s149_s15 = int_to_ptr.hbm [resolvable:$true] %s148_s15 }
  0x11   :  { %96 = vmatpush.msra.mxu0 %v69_v1  ;;  %v108_v8 = vld [vmem:[#allocation7 + $0x20] sm:$0xff]  ;;  %v107_v9 = vld [vmem:[#allocation7 + $0x18] sm:$0xff]  ;;  %v106_v10 = vld [vmem:[#allocation7 + $0x10] sm:$0xff] }
  0x12   :  { %129 = vmatpush.msra.mxu1 %v110_v4  ;;  %v105_v11 = vld [vmem:[#allocation7 + $0x8] sm:$0xff]  ;;  %v104_v12 = vld [vmem:[#allocation7] sm:$0xff]  ;;  %v168_v13 = vld [vmem:[%s328_s2] ss:$0 sm:$0xff] }
  0x13   :  { %97 = vmatpush.msra.mxu0 %v68_v3  ;;  %v169_v17 = vld [vmem:[%s330_s4] ss:$0 sm:$0xff] }
  0x14   :  { %130 = vmatpush.msra.mxu1 %v109_v5 }
  0x15   :  { %98 = vmatpush.msra.mxu0 %v67_v6 }
  0x16   :  { %160 = vmatmul.msk.f32.vlgmr.msra.gmra.mxu0 %vm75_vm1, %v66_v7  ;;  %131 = vmatpush.msra.mxu1 %v108_v8 }
  0x18   :  { %132 = vmatpush.msra.mxu1 %v107_v9 }
  0x1a   :  { %133 = vmatpush.msra.mxu1 %v106_v10 }
  0x1c   :  { %134 = vmatpush.msra.mxu1 %v105_v11 }
  0x1e   :  { %135 = vmatpush.msra.mxu1 %v104_v12 }
  0x93   :  { %v100_v14 = vpop.f32.mrf.mxu0 }
  0x94   :  { %v101_v15 = vadd.f32 %v168_v13, %v100_v14 }
  0x96   :  { %v103_v16 = vmax.f32 %v101_v15, 0.0 }
  0x98   :  { %161 = vmatmul.msk.f32.vlgmr.msra.gmra.mxu1 %vm116_vm2, %v103_v16 }
 0x115   :  { %v137_v18 = vpop.f32.mrf.mxu1 }
 0x116   :  { %v138_v19 = vadd.f32 %v169_v17, %v137_v18 }
 0x118   :  { %140 = vst [vmem:[#allocation8] sm:$0xff] %v138_v19 }
 0x119   :  { %151 = dma.vmem_to_hbm [thread:$0]  %s147_s12, 128, %s149_s15, [#allocation4]  }
 0x11a   :  { %270 = dma.done.wait [#allocation4], 128  }
 0x11b   :  { %271 = vsyncadd [#allocation4], 4294967168 }
 0x11c   :  { %156 = vsyncpa [#allocation3], 1 }
 0x11d   :  { %157 = vsyncpa [#allocation6], 1 }
 0x11e   :  { %158 = vsyncpa [#allocation4], 1 }

</bundles_post_ra>
